<compile_context>
chip_gen: v6e
topology: v6e:2x2x1
jax: 0.10.0
libtpu: 0.0.40
codegen_flags: <defaults>
</compile_context>

<pallas_src>
import jax
import jax.numpy as jnp
from jax.experimental import pallas as pl
from jax.experimental.pallas import tpu as pltpu

_LANE = 128


def _round_up(x, m):
    return ((x + m - 1) // m) * m


def _num_tensorcores():
    """2 on multi-TensorCore parts (v7x / v4 megacore), else 1 (v5e/v6e)."""
    try:
        kind = jax.devices()[0].device_kind.lower()
    except Exception:
        return 1
    if "v7" in kind or "v4" in kind:
        return 2
    return 1


def _sincos(h):
    """sin(h), cos(h) (f32) with one shared Cody-Waite range reduction.

    Cephes-style: reduce h modulo pi/2 with a 3-part split, evaluate two short
    minimax polynomials on |r| <= pi/4, then select/flip by quadrant.  Both
    sin(h) and cos(h) come out of the single reduction.
    """
    two_over_pi = 0.6366197723675814
    # pi/2 split into limited-mantissa parts (2x Cephes DP1/DP2/DP3).
    p1 = 1.5703125
    p2 = 4.837512969970703125e-4
    p3 = 7.54978995489188216e-8

    j = jnp.round(h * two_over_pi)
    r = ((h - j * p1) - j * p2) - j * p3
    z = r * r

    sin_r = r + r * z * (
        -1.6666654611e-1 + z * (8.3321608736e-3 + z * (-1.9515295891e-4))
    )
    cos_r = 1.0 - 0.5 * z + z * z * (
        4.166664568298827e-2
        + z * (-1.388731625493765e-3 + z * 2.443315711809948e-5)
    )

    q = j.astype(jnp.int32)
    swap = (q & 1) == 1          # quadrants 1,3: swap sin/cos
    sin_neg = (q & 2) == 2       # quadrants 2,3: negate sin
    cos_neg = ((q + 1) & 2) == 2  # quadrants 1,2: negate cos

    sin_h = jnp.where(swap, cos_r, sin_r)
    cos_h = jnp.where(swap, sin_r, cos_r)
    sin_h = jnp.where(sin_neg, -sin_h, sin_h)
    cos_h = jnp.where(cos_neg, -cos_h, cos_h)
    return sin_h, cos_h


def _make_kernel(tile_rows, steps_per_slice, valid_rows, exact):
    """Build the grid-step kernel as a closure over the static tiling params."""

    def kernel(u_ref, x_ref, v_ref, out_ref, acc_ref):
        i = pl.program_id(1)

        @pl.when(i == 0)
        def _():
            acc_ref[...] = jnp.zeros_like(acc_ref)

        x = x_ref[...].astype(jnp.float32)
        u = u_ref[...].astype(jnp.float32)
        v = v_ref[...].astype(jnp.float32)

        # Shared range reduction: s = sin(x/2), c = cos(x/2), sin(x) = 2*s*c.
        s_half, c_half = _sincos(0.5 * x)
        sin_x = 2.0 * s_half * c_half

        # delta_x = 1 - sin(x) + 0.5*sigmoid(x/10) + (1 + 0.5*sin(0.5x)) * u
        #         = 1.25 - sin(x) + 0.25*tanh(0.05*x) + (1 + 0.5*sin(0.5x)) * u
        delta = (
            1.25
            - sin_x
            + 0.25 * jnp.tanh(x * 0.05)
            + (1.0 + 0.5 * s_half) * u
        )
        diff = delta - v
        d2 = diff * diff

        def fold(vals):
            # (tile_rows,128) -> (8,128) with pure VPU adds; the expensive
            # cross-lane reduce only happens once, in the epilogue below.
            return jnp.sum(vals.reshape(-1, 8, _LANE), axis=0)

        if exact:
            acc_ref[...] += fold(d2)
        else:
            g = pl.program_id(0) * steps_per_slice + i
            start = g * tile_rows
            needs_mask = start + tile_rows > valid_rows

            @pl.when(jnp.logical_not(needs_mask))
            def _():
                acc_ref[...] += fold(d2)

            @pl.when(needs_mask)
            def _():
                # Edge block: rows past `valid_rows` contain unspecified data
                # (Pallas only DMAs the in-bounds part) — mask BEFORE the
                # accumulate.  jnp.where is a select, so NaN garbage is safe.
                row_ids = start + jax.lax.broadcasted_iota(
                    jnp.int32, (tile_rows, 1), 0
                )
                d2m = jnp.where(row_ids < valid_rows, d2, 0.0)
                acc_ref[...] += fold(d2m)

        @pl.when(i == pl.num_programs(1) - 1)
        def _():
            out_ref[0, 0] = jnp.sum(acc_ref[...])

    return kernel


def loss_define_forward(u_t, x_t, v_t, *, tile_rows=2048, num_slices=None):
    """Pallas equivalent of loss_define.forward. Returns a scalar f32 (MSE)."""
    assert u_t.shape == x_t.shape == v_t.shape
    total_n = int(u_t.size)
    if total_n == 0:
        return jnp.float32(jnp.nan)  # torch MSELoss on empty input is nan

    # Ravel only (bitcast for contiguous arrays); keep the caller's dtype.
    u_flat = u_t.reshape(-1)
    x_flat = x_t.reshape(-1)
    v_flat = v_t.reshape(-1)

    valid_rows = total_n // _LANE       # full 128-wide rows for the kernel
    bulk_n = valid_rows * _LANE
    tail_n = total_n - bulk_n           # < 128 leftover elements

    itemsize = max(
        jnp.dtype(u_t.dtype).itemsize,
        jnp.dtype(x_t.dtype).itemsize,
        jnp.dtype(v_t.dtype).itemsize,
    )
    # Keep per-step DMA bytes roughly constant across dtypes.
    if itemsize < 4 and tile_rows <= 2048:
        tile_rows *= 2

    sse = jnp.float32(0.0)

    if valid_rows > 0:
        if num_slices is None:
            num_slices = _num_tensorcores()

        # tile_rows: multiple of 8 (for the (8,128) fold), clamped for small
        # inputs instead of degrading to row-at-a-time tiling.
        tile_rows = _round_up(max(8, min(tile_rows, _round_up(valid_rows, 8))), 8)
        total_blocks = pl.cdiv(valid_rows, tile_rows)
        num_slices = max(1, min(num_slices, total_blocks))
        steps_per_slice = pl.cdiv(total_blocks, num_slices)
        # If the grid covers exactly valid_rows rows, no masking code is emitted.
        exact = num_slices * steps_per_slice * tile_rows == valid_rows

        if bulk_n == total_n:
            # Pure bitcast reshape — no pad, no copy, no cast.
            u2 = u_flat.reshape(valid_rows, _LANE)
            x2 = x_flat.reshape(valid_rows, _LANE)
            v2 = v_flat.reshape(valid_rows, _LANE)
        else:
            # Ragged tail: kernel takes the 128-aligned bulk; the <128-element
            # tail is added in plain JAX below (no jnp.pad round-trip).
            u2 = jax.lax.slice(u_flat, (0,), (bulk_n,)).reshape(valid_rows, _LANE)
            x2 = jax.lax.slice(x_flat, (0,), (bulk_n,)).reshape(valid_rows, _LANE)
            v2 = jax.lax.slice(v_flat, (0,), (bulk_n,)).reshape(valid_rows, _LANE)

        def idx_map(s, i):
            # Clamp so grid steps past the last block never issue a fully
            # out-of-bounds DMA; their contribution is zeroed by the row mask.
            g = jnp.minimum(s * steps_per_slice + i, total_blocks - 1)
            return (g, 0)

        row_spec = pl.BlockSpec((tile_rows, _LANE), idx_map)

        # Explicit VMEM budget: 3 inputs x 2 buffers + generous headroom for
        # the full-tile f32 intermediates of the elementwise expression.
        tile_bytes_in = tile_rows * _LANE * itemsize
        temps_bytes = 12 * tile_rows * _LANE * 4
        vmem_limit = int(
            min(max(3 * 2 * tile_bytes_in + temps_bytes + (4 << 20), 32 << 20),
                40 << 20)
        )

        kernel = _make_kernel(tile_rows, steps_per_slice, valid_rows, exact)

        partials = pl.pallas_call(
            kernel,
            out_shape=jax.ShapeDtypeStruct((num_slices, 1), jnp.float32),
            grid_spec=pltpu.PrefetchScalarGridSpec(
                num_scalar_prefetch=0,
                grid=(num_slices, steps_per_slice),
                in_specs=[row_spec, row_spec, row_spec],
                out_specs=pl.BlockSpec(
                    (1, 1), lambda s, i: (s, 0), memory_space=pltpu.SMEM
                ),
                scratch_shapes=[pltpu.VMEM((8, _LANE), jnp.float32)],
            ),
            compiler_params=pltpu.CompilerParams(
                dimension_semantics=("parallel", "arbitrary"),
                vmem_limit_bytes=vmem_limit,
            ),
        )(u2, x2, v2)
        sse = sse + jnp.sum(partials)

    if tail_n:
        # <128 elements — negligible, done with the exact reference formula.
        ut = jax.lax.slice(u_flat, (bulk_n,), (total_n,)).astype(jnp.float32)
        xt = jax.lax.slice(x_flat, (bulk_n,), (total_n,)).astype(jnp.float32)
        vt = jax.lax.slice(v_flat, (bulk_n,), (total_n,)).astype(jnp.float32)
        delta = (
            1.0
            - jnp.sin(xt)
            + 0.5 / (1.0 + jnp.exp(-xt / 10.0))
            + (1.0 + 0.5 * jnp.sin(0.5 * xt)) * ut
        )
        sse = sse + jnp.sum((delta - vt) ** 2)

    return sse / jnp.float32(total_n)


def _reference(u_t, x_t, v_t):
    x = x_t.astype(jnp.float32)
    u = u_t.astype(jnp.float32)
    v = v_t.astype(jnp.float32)
    delta_x = (
        1.0
        - jnp.sin(x)
        + 0.5 / (1.0 + jnp.exp(-x / 10.0))
        + (1.0 + 0.5 * jnp.sin(x * 0.5)) * u
    )
    return jnp.mean((delta_x - v) ** 2)


if __name__ == "__main__":
    key = jax.random.PRNGKey(0)
    keys = jax.random.split(key, 9)

    # Case 1: small NCHW-shaped f32 inputs, element count divisible by 128
    # (zero-copy bitcast path, single exact block).
    shape = (2, 4, 16, 16)  # 2048 elements -> (16, 128) slab
    u1 = jax.random.normal(keys[0], shape, dtype=jnp.float32)
    x1 = jax.random.normal(keys[1], shape, dtype=jnp.float32)
    v1 = jax.random.normal(keys[2], shape, dtype=jnp.float32)
    out1 = jax.block_until_ready(loss_define_forward(u1, x1, v1))
    ref1 = _reference(u1, x1, v1)
    assert jnp.allclose(out1, ref1, rtol=1e-5, atol=1e-5), (out1, ref1)

    # Case 2: non-divisible element count (ragged tail in plain JAX + in-kernel
    # row masking of the partial edge block).
    shape2 = (3, 5, 7, 11)  # 1155 elements
    u2 = jax.random.normal(keys[3], shape2, dtype=jnp.float32)
    x2 = jax.random.normal(keys[4], shape2, dtype=jnp.float32)
    v2 = jax.random.normal(keys[5], shape2, dtype=jnp.float32)
    out2 = jax.block_until_ready(loss_define_forward(u2, x2, v2))
    ref2 = _reference(u2, x2, v2)
    assert jnp.allclose(out2, ref2, rtol=1e-5, atol=1e-5), (out2, ref2)

    # Case 3: same data, forced small tile + 2 slices to exercise the
    # multi-block / multi-slice / masked-edge paths even on a 1-TC chip.
    out3 = jax.block_until_ready(
        loss_define_forward(u2, x2, v2, tile_rows=8, num_slices=2)
    )
    assert jnp.allclose(out3, ref2, rtol=1e-5, atol=1e-5), (out3, ref2)

    # Case 4: bf16 inputs stay packed in HBM (no wrapper cast); kernel upcasts.
    shape4 = (4, 8, 16, 8)  # 4096 elements
    u4 = jax.random.normal(keys[6], shape4, dtype=jnp.bfloat16)
    x4 = jax.random.normal(keys[7], shape4, dtype=jnp.bfloat16)
    v4 = jax.random.normal(keys[8], shape4, dtype=jnp.bfloat16)
    out4 = jax.block_until_ready(loss_define_forward(u4, x4, v4))
    ref4 = _reference(u4, x4, v4)
    assert jnp.allclose(out4, ref4, rtol=1e-5, atol=1e-5), (out4, ref4)

    print("KERNEL_OK")
</pallas_src>

<mosaic_0001>
module attributes {stable_mosaic.version = 11 : i64} {
  func.func @kernel(%arg0: i32, %arg1: i32, %arg2: memref<16x128xf32, #tpu.memory_space<vmem>>, %arg3: memref<16x128xf32, #tpu.memory_space<vmem>>, %arg4: memref<16x128xf32, #tpu.memory_space<vmem>>, %arg5: memref<1x1xf32, #tpu.memory_space<smem>>, %arg6: memref<8x128xf32, #tpu.memory_space<vmem>>) attributes {dimension_semantics = [#tpu.dimension_semantics<parallel>, #tpu.dimension_semantics<arbitrary>], iteration_bounds = array<i64: 1, 1>, scalar_prefetch = 0 : i64, scratch_operands = 1 : i64, tpu.core_type = #tpu.core_type<tc>, window_params = [{transform_indices = @transform_0, window_bounds = array<i64: 16, 128>}, {transform_indices = @transform_1, window_bounds = array<i64: 16, 128>}, {transform_indices = @transform_2, window_bounds = array<i64: 16, 128>}, {transform_indices = @transform_3, window_bounds = array<i64: 1, 1>}]} {
    %c0_i32 = arith.constant 0 : i32
    %0 = arith.cmpi eq, %arg1, %c0_i32 : i32
    %1 = arith.extui %0 : i1 to i32
    %c0_i32_0 = arith.constant 0 : i32
    %2 = arith.cmpi ne, %1, %c0_i32_0 : i32
    scf.if %2 {
      %cst_38 = arith.constant 0.000000e+00 : f32
      %95 = vector.broadcast %cst_38 : f32 to vector<8x128xf32>
      %c0_39 = arith.constant 0 : index
      %c0_40 = arith.constant 0 : index
      %96 = vector.load %arg6[%c0_39, %c0_40] : memref<8x128xf32, #tpu.memory_space<vmem>>, vector<8x128xf32>
      tpu.vector_store %arg6[%c0_39, %c0_40], %95 {strides = array<i32>} : memref<8x128xf32, #tpu.memory_space<vmem>>, vector<8x128xf32>,
    } else {
    }
    %c0 = arith.constant 0 : index
    %c0_1 = arith.constant 0 : index
    %3 = vector.load %arg3[%c0, %c0_1] : memref<16x128xf32, #tpu.memory_space<vmem>>, vector<16x128xf32>
    %c0_2 = arith.constant 0 : index
    %c0_3 = arith.constant 0 : index
    %4 = vector.load %arg2[%c0_2, %c0_3] : memref<16x128xf32, #tpu.memory_space<vmem>>, vector<16x128xf32>
    %c0_4 = arith.constant 0 : index
    %c0_5 = arith.constant 0 : index
    %5 = vector.load %arg4[%c0_4, %c0_5] : memref<16x128xf32, #tpu.memory_space<vmem>>, vector<16x128xf32>
    %cst = arith.constant 5.000000e-01 : f32
    %6 = vector.broadcast %cst : f32 to vector<16x128xf32>
    %7 = arith.mulf %6, %3 : vector<16x128xf32>
    %cst_6 = arith.constant 0.636619746 : f32
    %8 = vector.broadcast %cst_6 : f32 to vector<16x128xf32>
    %9 = arith.mulf %7, %8 : vector<16x128xf32>
    %10 = math.roundeven %9 : vector<16x128xf32>
    %cst_7 = arith.constant 1.5703125 : f32
    %11 = vector.broadcast %cst_7 : f32 to vector<16x128xf32>
    %12 = arith.mulf %10, %11 : vector<16x128xf32>
    %13 = arith.subf %7, %12 : vector<16x128xf32>
    %cst_8 = arith.constant 4.83751297E-4 : f32
    %14 = vector.broadcast %cst_8 : f32 to vector<16x128xf32>
    %15 = arith.mulf %10, %14 : vector<16x128xf32>
    %16 = arith.subf %13, %15 : vector<16x128xf32>
    %cst_9 = arith.constant 7.549790e-08 : f32
    %17 = vector.broadcast %cst_9 : f32 to vector<16x128xf32>
    %18 = arith.mulf %10, %17 : vector<16x128xf32>
    %19 = arith.subf %16, %18 : vector<16x128xf32>
    %20 = arith.mulf %19, %19 : vector<16x128xf32>
    %21 = arith.mulf %19, %20 : vector<16x128xf32>
    %cst_10 = arith.constant -1.95152956E-4 : f32
    %22 = vector.broadcast %cst_10 : f32 to vector<16x128xf32>
    %23 = arith.mulf %20, %22 : vector<16x128xf32>
    %cst_11 = arith.constant 0.00833216123 : f32
    %24 = vector.broadcast %cst_11 : f32 to vector<16x128xf32>
    %25 = arith.addf %24, %23 : vector<16x128xf32>
    %26 = arith.mulf %20, %25 : vector<16x128xf32>
    %cst_12 = arith.constant -0.166666552 : f32
    %27 = vector.broadcast %cst_12 : f32 to vector<16x128xf32>
    %28 = arith.addf %27, %26 : vector<16x128xf32>
    %29 = arith.mulf %21, %28 : vector<16x128xf32>
    %30 = arith.addf %19, %29 : vector<16x128xf32>
    %cst_13 = arith.constant 5.000000e-01 : f32
    %31 = vector.broadcast %cst_13 : f32 to vector<16x128xf32>
    %32 = arith.mulf %31, %20 : vector<16x128xf32>
    %cst_14 = arith.constant 1.000000e+00 : f32
    %33 = vector.broadcast %cst_14 : f32 to vector<16x128xf32>
    %34 = arith.subf %33, %32 : vector<16x128xf32>
    %35 = arith.mulf %20, %20 : vector<16x128xf32>
    %cst_15 = arith.constant 2.44331568E-5 : f32
    %36 = vector.broadcast %cst_15 : f32 to vector<16x128xf32>
    %37 = arith.mulf %20, %36 : vector<16x128xf32>
    %cst_16 = arith.constant -0.00138873165 : f32
    %38 = vector.broadcast %cst_16 : f32 to vector<16x128xf32>
    %39 = arith.addf %38, %37 : vector<16x128xf32>
    %40 = arith.mulf %20, %39 : vector<16x128xf32>
    %cst_17 = arith.constant 0.0416666456 : f32
    %41 = vector.broadcast %cst_17 : f32 to vector<16x128xf32>
    %42 = arith.addf %41, %40 : vector<16x128xf32>
    %43 = arith.mulf %35, %42 : vector<16x128xf32>
    %44 = arith.addf %34, %43 : vector<16x128xf32>
    %45 = arith.fptosi %10 : vector<16x128xf32> to vector<16x128xi32>
    %c1_i32 = arith.constant 1 : i32
    %46 = vector.broadcast %c1_i32 : i32 to vector<16x128xi32>
    %47 = arith.andi %45, %46 : vector<16x128xi32>
    %c1_i32_18 = arith.constant 1 : i32
    %48 = vector.broadcast %c1_i32_18 : i32 to vector<16x128xi32>
    %49 = arith.cmpi eq, %47, %48 : vector<16x128xi32>
    %c2_i32 = arith.constant 2 : i32
    %50 = vector.broadcast %c2_i32 : i32 to vector<16x128xi32>
    %51 = arith.andi %45, %50 : vector<16x128xi32>
    %c2_i32_19 = arith.constant 2 : i32
    %52 = vector.broadcast %c2_i32_19 : i32 to vector<16x128xi32>
    %53 = arith.cmpi eq, %51, %52 : vector<16x128xi32>
    %c1_i32_20 = arith.constant 1 : i32
    %54 = vector.broadcast %c1_i32_20 : i32 to vector<16x128xi32>
    %55 = arith.addi %45, %54 : vector<16x128xi32>
    %c2_i32_21 = arith.constant 2 : i32
    %56 = vector.broadcast %c2_i32_21 : i32 to vector<16x128xi32>
    %57 = arith.andi %55, %56 : vector<16x128xi32>
    %c2_i32_22 = arith.constant 2 : i32
    %58 = vector.broadcast %c2_i32_22 : i32 to vector<16x128xi32>
    %59 = arith.cmpi eq, %57, %58 : vector<16x128xi32>
    %60 = arith.select %49, %44, %30 : vector<16x128xi1>, vector<16x128xf32>
    %61 = arith.select %49, %30, %44 : vector<16x128xi1>, vector<16x128xf32>
    %cst_23 = arith.constant 0.000000e+00 : f32
    %62 = vector.broadcast %cst_23 : f32 to vector<16x128xf32>
    %63 = arith.subf %62, %60 : vector<16x128xf32>
    %64 = arith.select %53, %63, %60 : vector<16x128xi1>, vector<16x128xf32>
    %cst_24 = arith.constant 0.000000e+00 : f32
    %65 = vector.broadcast %cst_24 : f32 to vector<16x128xf32>
    %66 = arith.subf %65, %61 : vector<16x128xf32>
    %67 = arith.select %59, %66, %61 : vector<16x128xi1>, vector<16x128xf32>
    %cst_25 = arith.constant 2.000000e+00 : f32
    %68 = vector.broadcast %cst_25 : f32 to vector<16x128xf32>
    %69 = arith.mulf %68, %64 : vector<16x128xf32>
    %70 = arith.mulf %69, %67 : vector<16x128xf32>
    %cst_26 = arith.constant 1.250000e+00 : f32
    %71 = vector.broadcast %cst_26 : f32 to vector<16x128xf32>
    %72 = arith.subf %71, %70 : vector<16x128xf32>
    %cst_27 = arith.constant 5.000000e-02 : f32
    %73 = vector.broadcast %cst_27 : f32 to vector<16x128xf32>
    %74 = arith.mulf %3, %73 : vector<16x128xf32>
    %75 = math.tanh %74 : vector<16x128xf32>
    %cst_28 = arith.constant 2.500000e-01 : f32
    %76 = vector.broadcast %cst_28 : f32 to vector<16x128xf32>
    %77 = arith.mulf %76, %75 : vector<16x128xf32>
    %78 = arith.addf %72, %77 : vector<16x128xf32>
    %cst_29 = arith.constant 5.000000e-01 : f32
    %79 = vector.broadcast %cst_29 : f32 to vector<16x128xf32>
    %80 = arith.mulf %79, %64 : vector<16x128xf32>
    %cst_30 = arith.constant 1.000000e+00 : f32
    %81 = vector.broadcast %cst_30 : f32 to vector<16x128xf32>
    %82 = arith.addf %81, %80 : vector<16x128xf32>
    %83 = arith.mulf %82, %4 : vector<16x128xf32>
    %84 = arith.addf %78, %83 : vector<16x128xf32>
    %85 = arith.subf %84, %5 : vector<16x128xf32>
    %86 = arith.mulf %85, %85 : vector<16x128xf32>
    %c0_31 = arith.constant 0 : index
    %c0_32 = arith.constant 0 : index
    %87 = vector.load %arg6[%c0_31, %c0_32] : memref<8x128xf32, #tpu.memory_space<vmem>>, vector<8x128xf32>
    %88 = vector.shape_cast %86 : vector<16x128xf32> to vector<2x8x128xf32>
    %cst_33 = arith.constant dense<0.000000e+00> : vector<8x128xf32>
    %89 = vector.multi_reduction <add>, %88, %cst_33 [0] : vector<2x8x128xf32> to vector<8x128xf32>
    %90 = arith.addf %87, %89 : vector<8x128xf32>
    %c0_34 = arith.constant 0 : index
    %c0_35 = arith.constant 0 : index
    %91 = vector.load %arg6[%c0_34, %c0_35] : memref<8x128xf32, #tpu.memory_space<vmem>>, vector<8x128xf32>
    tpu.vector_store %arg6[%c0_34, %c0_35], %90 {strides = array<i32>} : memref<8x128xf32, #tpu.memory_space<vmem>>, vector<8x128xf32>,
    %c0_i32_36 = arith.constant 0 : i32
    %92 = arith.cmpi eq, %arg1, %c0_i32_36 : i32
    %93 = arith.extui %92 : i1 to i32
    %c0_i32_37 = arith.constant 0 : i32
    %94 = arith.cmpi ne, %93, %c0_i32_37 : i32
    scf.if %94 {
      %c0_38 = arith.constant 0 : index
      %c0_39 = arith.constant 0 : index
      %95 = vector.load %arg6[%c0_38, %c0_39] : memref<8x128xf32, #tpu.memory_space<vmem>>, vector<8x128xf32>
      %96 = vector.shape_cast %95 : vector<8x128xf32> to vector<1x8x128xf32>
      %cst_40 = arith.constant dense<0.000000e+00> : vector<1xf32>
      %97 = vector.multi_reduction <add>, %96, %cst_40 [1, 2] : vector<1x8x128xf32> to vector<1xf32>
      %98 = vector.shape_cast %97 : vector<1xf32> to vector<1x1x1xf32>
      %99 = vector.extract %98[0, 0, 0] : f32 from vector<1x1x1xf32>
      %c0_41 = arith.constant 0 : index
      %c0_42 = arith.constant 0 : index
      %100 = memref.load %arg5[%c0_41, %c0_42] : memref<1x1xf32, #tpu.memory_space<smem>>
      memref.store %99, %arg5[%c0_41, %c0_42] : memref<1x1xf32, #tpu.memory_space<smem>>
    } else {
    }
    return
  }
  func.func @transform_0(%arg0: i32, %arg1: i32) -> (i32, i32) {
    %c1_i32 = arith.constant 1 : i32
    %0 = arith.muli %arg0, %c1_i32 : i32
    %1 = arith.addi %0, %arg1 : i32
    %c0_i32 = arith.constant 0 : i32
    %2 = arith.minsi %1, %c0_i32 : i32
    %c0_i32_0 = arith.constant 0 : i32
    %c0_i32_1 = arith.constant 0 : i32
    return %2, %c0_i32_0 : i32, i32
  }
  func.func @transform_1(%arg0: i32, %arg1: i32) -> (i32, i32) {
    %c1_i32 = arith.constant 1 : i32
    %0 = arith.muli %arg0, %c1_i32 : i32
    %1 = arith.addi %0, %arg1 : i32
    %c0_i32 = arith.constant 0 : i32
    %2 = arith.minsi %1, %c0_i32 : i32
    %c0_i32_0 = arith.constant 0 : i32
    %c0_i32_1 = arith.constant 0 : i32
    return %2, %c0_i32_0 : i32, i32
  }
  func.func @transform_2(%arg0: i32, %arg1: i32) -> (i32, i32) {
    %c1_i32 = arith.constant 1 : i32
    %0 = arith.muli %arg0, %c1_i32 : i32
    %1 = arith.addi %0, %arg1 : i32
    %c0_i32 = arith.constant 0 : i32
    %2 = arith.minsi %1, %c0_i32 : i32
    %c0_i32_0 = arith.constant 0 : i32
    %c0_i32_1 = arith.constant 0 : i32
    return %2, %c0_i32_0 : i32, i32
  }
  func.func @transform_3(%arg0: i32, %arg1: i32) -> (i32, i32) {
    %c0_i32 = arith.constant 0 : i32
    %c0_i32_0 = arith.constant 0 : i32
    return %arg0, %c0_i32 : i32, i32
  }
}

</mosaic_0001>

<bundles_post_ra>
// kernel: tpu_custom_call.1
= control target key start
LH: loop header
LB: loop body
LE: loop exit
PB: predicated region body
PF: predicated region fallthrough
CT: control target
= control target key end

     0   :  { %8 = vsyncpa [#allocation4], 0  ;;  %s401_s0 = inlined_call_operand.hbm [shape: f32[16,128], index: 0, kind: input, shape index: {}]   ;;  %s402_s1 = inlined_call_operand.hbm [shape: f32[16,128], index: 1, kind: input, shape index: {}]   ;;  %s403_s2 = inlined_call_operand.hbm [shape: f32[16,128], index: 2, kind: input, shape index: {}]   ;;  %s404_s3 = inlined_call_operand.hbm [shape: f32[1,1], index: 3, kind: output, shape index: {}]  }
   0x1   :  { %9 = vsyncpa [#allocation7], 0 }
   0x2   :  { %10 = vsyncpa [#allocation5], 0  ;;  %s351_s12 = smov [#allocation6]   ;;  %s352_s14 = smov [#allocation3]  }
   0x3   :  { %s40_s13 = sshll.u32 %s351_s12, 4  ;;  %s22_s15 = sshll.u32 %s352_s14, 4  ;;  %s41_s13 = int_to_ptr.vmem [resolvable:$true] %s40_s13  ;;  %s23_s15 = int_to_ptr.vmem [resolvable:$true] %s22_s15 }
   0x4   :  { %s285_s16 = scalar_lea.vmem %s41_s13, 256  ;;  %p290_p1 = scmp.lt.s32.totalorder %s41_s13, %s41_s13 }
   0x5   :  { %p286_p0 = scmp.ne.s32.totalorder %s41_s13, %s285_s16  ;;  %p291_p2 = scmp.lt.s32.totalorder %s285_s16, %s285_s16 }
   0x7   :  { %p292_p3 = por %p291_p2, %p290_p1 }
   0x9   :  { %p293_p4 = pnand %p292_p3, %p286_p0 }
   0xb   :  { %296 = shalt.err (!%p293_p4)
}
   0xc   :  { %s353_s17 = smov 128   ;;  %s354_s18 = smov 8  }
   0xd   :  { %46 = dma.hbm_to_vmem [thread:$0]  %s402_s1, 256, %s41_s13, [#allocation7], %s353_s17, %s353_s17, %s354_s18  }
   0xe   :  { %s305_s21 = scalar_lea.vmem %s23_s15, 256  ;;  %p310_p6 = scmp.lt.s32.totalorder %s23_s15, %s23_s15 }
   0xf   :  { %p306_p5 = scmp.ne.s32.totalorder %s23_s15, %s305_s21  ;;  %p311_p7 = scmp.lt.s32.totalorder %s305_s21, %s305_s21 }
  0x11   :  { %p312_p8 = por %p311_p7, %p310_p6 }
  0x13   :  { %p313_p9 = pnand %p312_p8, %p306_p5 }
  0x15   :  { %316 = shalt.err (!%p313_p9)
}
  0x16   :  { %28 = dma.hbm_to_vmem [thread:$0]  %s401_s0, 256, %s23_s15, [#allocation4], %s353_s17, %s353_s17, %s354_s18  }
  0x17   :  { %s355_s24 = smov [#allocation8]  }
  0x18   :  { %s58_s25 = sshll.u32 %s355_s24, 4  ;;  %s59_s25 = int_to_ptr.vmem [resolvable:$true] %s58_s25 }
  0x19   :  { %s325_s26 = scalar_lea.vmem %s59_s25, 256  ;;  %p330_p11 = scmp.lt.s32.totalorder %s59_s25, %s59_s25 }
  0x1a   :  { %p326_p10 = scmp.ne.s32.totalorder %s59_s25, %s325_s26  ;;  %p331_p12 = scmp.lt.s32.totalorder %s325_s26, %s325_s26 }
  0x1c   :  { %p332_p13 = por %p331_p12, %p330_p11 }
  0x1e   :  { %p333_p0 = pnand %p332_p13, %p326_p10 }
  0x20   :  { %336 = shalt.err (!%p333_p0)
}
  0x21   :  { %64 = dma.hbm_to_vmem [thread:$0]  %s403_s2, 256, %s59_s25, [#allocation7], %s353_s17, %s353_s17, %s354_s18  }
  0x22   :  { %345 = dma.done.wait [#allocation4], 256  }
  0x23   :  { %346 = vsyncadd [#allocation4], 4294967040 }
  0x24   :  { %347 = dma.done.wait [#allocation7], 512  }
  0x25   :  { %348 = vsyncadd [#allocation7], 4294966784  ;;  %v91_v0 = vld [vmem:[#allocation6] sm:$0xff]  ;;  %v92_v1 = vld [vmem:[#allocation6 + $0x8] sm:$0xff]  ;;  %s356_s2 = smov [#allocation9]  }
  0x26   :  { %v97_v2 = vmul.f32 0.5, %v91_v0  ;;  %v98_v3 = vmul.f32 0.5, %v92_v1  ;;  %v183_v32 = vmul.f32 0.05, %v91_v0  ;;  %v184_v34 = vmul.f32 0.05, %v92_v1 }
  0x28   :  { %v99_v4 = vmul.f32 0.63661975, %v97_v2  ;;  %v100_v5 = vmul.f32 0.63661975, %v98_v3  ;;  %273 = vtanh.f32 %v183_v32 }
  0x29   :  { %275 = vtanh.f32 %v184_v34 }
  0x2a   :  { %v386_v6 = vcvt.f32.s32 %v99_v4  ;;  %v243_v7 = vand.u32 2147483647, %v99_v4  ;;  %v388_v8 = vcvt.f32.s32 %v100_v5  ;;  %v248_v10 = vand.u32 2147483648, %v99_v4 }
  0x2b   :  { %v251_v11 = vand.u32 2147483647, %v100_v5  ;;  %v256_v13 = vand.u32 2147483648, %v100_v5 }
  0x2c   :  { %v246_v9 = vcvt.s32.f32 %v386_v6  ;;  %v254_v12 = vcvt.s32.f32 %v388_v8  ;;  %vm244_vm0 = vcmp.lt.f32.partialorder %v243_v7, 8388608.0  ;;  %v151_v42 = vand.u32 1, %v386_v6 }
  0x2d   :  { %vm252_vm1 = vcmp.lt.f32.partialorder %v251_v11, 8388608.0  ;;  %v159_v43 = vadd.s32 1, %v386_v6  ;;  %v160_v55 = vadd.s32 1, %v388_v8  ;;  %v152_v59 = vand.u32 1, %v388_v8 }
  0x2e   :  { %v247_v14 = vand.u32 2147483647, %v246_v9  ;;  %v255_v15 = vand.u32 2147483647, %v254_v12  ;;  %v155_v63 = vand.u32 2, %v386_v6  ;;  %vm153_vm2 = vcmp.eq.s32.totalorder %v151_v42, 1 }
  0x2f   :  { %v161_v7 = vand.u32 2, %v159_v43  ;;  %v162_v9 = vand.u32 2, %v160_v55  ;;  %vm154_vm3 = vcmp.eq.s32.totalorder %v152_v59, 1  ;;  %v95_v43 = vld [vmem:[#allocation8] sm:$0xff] }
  0x30   :  { %v249_v16 = vor.u32 %v248_v10, %v247_v14  ;;  %v257_v17 = vor.u32 %v256_v13, %v255_v15  ;;  %vm157_vm4 = vcmp.eq.s32.totalorder %v155_v63, 2 }
  0x31   :  { %vm163_vm6 = vcmp.eq.s32.totalorder %v161_v7, 2  ;;  %vm164_vm7 = vcmp.eq.s32.totalorder %v162_v9, 2 }
  0x32   :  { %v250_v18 = vsel %vm244_vm0, %v249_v16, %v99_v4  ;;  %v258_v19 = vsel %vm252_vm1, %v257_v17, %v100_v5 }
  0x33   :  { %v103_v20 = vmul.f32 1.5703125, %v250_v18  ;;  %v107_v21 = vmul.f32 0.0004837513, %v250_v18  ;;  %v104_v22 = vmul.f32 1.5703125, %v258_v19  ;;  %v108_v23 = vmul.f32 0.0004837513, %v258_v19 }
  0x34   :  { %v111_v25 = vmul.f32 7.54979e-08, %v250_v18  ;;  %v112_v27 = vmul.f32 7.54979e-08, %v258_v19 }
  0x35   :  { %v105_v24 = vsub.f32 %v97_v2, %v103_v20  ;;  %v106_v26 = vsub.f32 %v98_v3, %v104_v22  ;;  %v156_v3 = vand.u32 2, %v388_v8  ;;  %v274_v14 = vpop.eup %273 }
  0x36   :  { %v276_v16 = vpop.eup %275 }
  0x37   :  { %v109_v28 = vsub.f32 %v105_v24, %v107_v21  ;;  %v110_v29 = vsub.f32 %v106_v26, %v108_v23  ;;  %vm158_vm5 = vcmp.eq.s32.totalorder %v156_v3, 2 }
  0x39   :  { %v113_v30 = vsub.f32 %v109_v28, %v111_v25  ;;  %v114_v31 = vsub.f32 %v110_v29, %v112_v27  ;;  %v93_v28 = vld [vmem:[#allocation3] sm:$0xff] }
  0x3b   :  { %v115_v33 = vmul.f32 %v113_v30, %v113_v30  ;;  %v116_v35 = vmul.f32 %v114_v31, %v114_v31 }
  0x3d   :  { %v119_v36 = vmul.f32 -0.00019515296, %v115_v33  ;;  %v120_v37 = vmul.f32 -0.00019515296, %v116_v35  ;;  %v137_v39 = vmul.f32 2.4433157e-05, %v115_v33  ;;  %v117_v44 = vmul.f32 %v115_v33, %v113_v30 }
  0x3e   :  { %v138_v41 = vmul.f32 2.4433157e-05, %v116_v35  ;;  %v131_v46 = vmul.f32 0.5, %v115_v33  ;;  %v118_v48 = vmul.f32 %v116_v35, %v114_v31  ;;  %v132_v50 = vmul.f32 0.5, %v116_v35 }
  0x3f   :  { %v121_v38 = vadd.f32 0.008332161, %v119_v36  ;;  %v122_v40 = vadd.f32 0.008332161, %v120_v37  ;;  %v139_v47 = vadd.f32 -0.0013887316, %v137_v39  ;;  %v135_v53 = vmul.f32 %v115_v33, %v115_v33 }
  0x40   :  { %v140_v51 = vadd.f32 -0.0013887316, %v138_v41  ;;  %v136_v57 = vmul.f32 %v116_v35, %v116_v35  ;;  %v133_v61 = vsub.f32 1.0, %v131_v46  ;;  %v134_v1 = vsub.f32 1.0, %v132_v50 }
  0x41   :  { %v123_v45 = vmul.f32 %v121_v38, %v115_v33  ;;  %v124_v49 = vmul.f32 %v122_v40, %v116_v35  ;;  %v141_v54 = vmul.f32 %v139_v47, %v115_v33  ;;  %v187_v33 = vmul.f32 0.25, %v274_v14 }
  0x42   :  { %v142_v58 = vmul.f32 %v140_v51, %v116_v35  ;;  %v188_v36 = vmul.f32 0.25, %v276_v16 }
  0x43   :  { %v125_v52 = vadd.f32 -0.16666655, %v123_v45  ;;  %v126_v56 = vadd.f32 -0.16666655, %v124_v49  ;;  %v143_v62 = vadd.f32 0.041666646, %v141_v54 }
  0x44   :  { %v144_v2 = vadd.f32 0.041666646, %v142_v58  ;;  %v96_v45 = vld [vmem:[#allocation8 + $0x8] sm:$0xff] }
  0x45   :  { %v127_v60 = vmul.f32 %v125_v52, %v117_v44  ;;  %v128_v0 = vmul.f32 %v126_v56, %v118_v48  ;;  %v145_v5 = vmul.f32 %v143_v62, %v135_v53 }
  0x46   :  { %v146_v11 = vmul.f32 %v144_v2, %v136_v57 }
  0x47   :  { %v129_v4 = vadd.f32 %v127_v60, %v113_v30  ;;  %v130_v10 = vadd.f32 %v128_v0, %v114_v31  ;;  %v147_v12 = vadd.f32 %v145_v5, %v133_v61  ;;  %v94_v31 = vld [vmem:[#allocation3 + $0x8] sm:$0xff] }
  0x48   :  { %v148_v13 = vadd.f32 %v146_v11, %v134_v1 }
  0x49   :  { %v165_v6 = vsel %vm153_vm2, %v147_v12, %v129_v4  ;;  %v167_v15 = vsel %vm153_vm2, %v129_v4, %v147_v12 }
  0x4a   :  { %v166_v17 = vsel %vm154_vm3, %v148_v13, %v130_v10  ;;  %v168_v8 = vsel %vm154_vm3, %v130_v10, %v148_v13  ;;  %v169_v18 = vsub.f32 0.0, %v165_v6  ;;  %v173_v19 = vsub.f32 0.0, %v167_v15 }
  0x4b   :  { %v170_v20 = vsub.f32 0.0, %v166_v17  ;;  %v174_v21 = vsub.f32 0.0, %v168_v8 }
  0x4c   :  { %v171_v22 = vsel %vm157_vm4, %v169_v18, %v165_v6  ;;  %v175_v23 = vsel %vm163_vm6, %v173_v19, %v167_v15 }
  0x4d   :  { %v172_v24 = vsel %vm158_vm5, %v170_v20, %v166_v17  ;;  %v176_v25 = vsel %vm164_vm7, %v174_v21, %v168_v8  ;;  %v177_v26 = vmul.f32 2.0, %v171_v22  ;;  %v191_v27 = vmul.f32 0.5, %v171_v22 }
  0x4e   :  { %v178_v29 = vmul.f32 2.0, %v172_v24  ;;  %v192_v30 = vmul.f32 0.5, %v172_v24 }
  0x4f   :  { %v179_v32 = vmul.f32 %v177_v26, %v175_v23  ;;  %v193_v34 = vadd.f32 1.0, %v191_v27 }
  0x50   :  { %v180_v35 = vmul.f32 %v178_v29, %v176_v25  ;;  %v194_v37 = vadd.f32 1.0, %v192_v30 }
  0x51   :  { %v181_v38 = vsub.f32 1.25, %v179_v32  ;;  %v195_v39 = vmul.f32 %v193_v34, %v93_v28 }
  0x52   :  { %v182_v40 = vsub.f32 1.25, %v180_v35  ;;  %v196_v41 = vmul.f32 %v194_v37, %v94_v31 }
  0x53   :  { %v189_v42 = vadd.f32 %v187_v33, %v181_v38 }
  0x54   :  { %v190_v44 = vadd.f32 %v188_v36, %v182_v40 }
  0x55   :  { %v197_v46 = vadd.f32 %v195_v39, %v189_v42 }
  0x56   :  { %v198_v47 = vadd.f32 %v196_v41, %v190_v44 }
  0x57   :  { %v199_v48 = vsub.f32 %v197_v46, %v95_v43 }
  0x58   :  { %v200_v49 = vsub.f32 %v198_v47, %v96_v45 }
  0x59   :  { %v201_v50 = vmul.f32 %v199_v48, %v199_v48 }
  0x5a   :  { %v202_v51 = vmul.f32 %v200_v49, %v200_v49 }
  0x5c   :  { %v204_v52 = vadd.f32 %v202_v51, %v201_v50 }
  0x5e   :  { %211 = vadd.xlane.f32.xlu0 %v204_v52 }
  0xe7   :  { %v212_v53 = vpop.xlane.xlu0 %211 }
  0xe8   :  { %v213_v54 = vrot.slane %v212_v53, 4 }
  0xea   :  { %v214_v55 = vadd.f32 %v213_v54, %v212_v53 }
  0xec   :  { %v215_v56 = vrot.slane %v214_v55, 2 }
  0xee   :  { %v216_v57 = vadd.f32 %v215_v56, %v214_v55 }
  0xf0   :  { %v217_v58 = vrot.slane %v216_v57, 1 }
  0xf2   :  { %v218_v59 = vadd.f32 %v217_v58, %v216_v57 }
  0xf4   :  { %265 = vpush %v218_v59 }
 0x125   :  { %s266_s0 = spop %265 }
 0x126   :  { %221 = sst [smem:[#allocation9]] %s266_s0 }
 0x127   :  { %229 = dma.smem_to_hbm %s356_s2, 16, %s404_s3, [#allocation5]  }
 0x128   :  { %349 = dma.done.wait [#allocation5], 16  }
 0x129   :  { %350 = vsyncadd [#allocation5], 4294967280 }
 0x12a   :  { %233 = sfence }
 0x12b   :  { %234 = vsyncpa [#allocation4], 1 }
 0x12c   :  { %235 = vsyncpa [#allocation7], 1 }
 0x12d   :  { %236 = vsyncpa [#allocation5], 1 }

</bundles_post_ra>
